<compile_context>
chip_gen: v7x
topology: tpu7x:2x2x1
jax: 0.10.0
libtpu: 0.0.40
codegen_flags: <defaults>
</compile_context>

<pallas_src>
import functools

import numpy as np
import jax
import jax.numpy as jnp
from jax import lax
from jax.experimental import pallas as pl
from jax.experimental.pallas import tpu as pltpu

LANES = 128                       # all feature axes are padded to this width
_NEG_INF = np.float32(-1e30)


def _round_up(v, m):
    return ((v + m - 1) // m) * m


# ---------------------------------------------------------------------------
# Parameter slab layout (ONE [R,128] bf16 array, DMA'd once, VMEM-resident)
#   rows [  0,128): W1 block  rows [0,in_ch):  [ W1 | (W1 @ a1d^T) at col H | 0 ]
#   rows [128,256): W2 block  rows [0,hidden): [ W2 | (W2 @ a2d^T) at col L | 0 ]
#   rows [256,384): W3 block  rows [0,latent): [ W3 | 0 ]
#   single rows (spaced 8 apart for clean sublane-aligned 1-row slices):
#     384: b1   392: b2   400: b3   408: a1_src   416: a2_src
# Zero rows/columns guarantee the stray "score" lane of each layer's
# activations is annihilated by the next matmul (exact zeros survive the
# bf16 cast, so this invariant holds in bf16 too).
# ---------------------------------------------------------------------------
_R_W1, _R_W2, _R_W3 = 0, LANES, 2 * LANES
_R_B1 = 3 * LANES
_R_B2 = _R_B1 + 8
_R_B3 = _R_B1 + 16
_R_A1S = _R_B1 + 24
_R_A2S = _R_B1 + 32
_SLAB_ROWS = _round_up(_R_A2S + 1, 16)   # multiple of 16: bf16 (16,128) tile


# ---------------------------------------------------------------------------
# Pallas kernel (one grid step == one graph-batch)
# ---------------------------------------------------------------------------
def _make_kernel(hidden, latent):
    def kernel(x_ref, adjb_ref, pool_ref, p_ref, out_ref):
        # additive adjacency bias: 0 for edge/self-loop, -1e30 otherwise
        adj_bias = adjb_ref[...].astype(jnp.float32)

        def gat(h_in, w_row, as_row, b_row, out_dim, bf16_inputs):
            w = p_ref[w_row:w_row + LANES, :]
            if not bf16_inputs:
                w = w.astype(jnp.float32)         # f32 activations -> f32 dot
            # One MXU push: projected features + folded dst-attention column.
            h_aug = jnp.dot(h_in, w, preferred_element_type=jnp.float32)   # [N,128]
            ad_col = h_aug[:, out_dim:out_dim + 1]                          # [N,1]
            # src score: a_s . h   (a_s row is zero beyond out_dim, so the
            # folded score lane / padding lanes contribute nothing)
            a_s = p_ref[as_row:as_row + 1, :].astype(jnp.float32)           # [1,128]
            as_r = lax.dot_general(a_s, h_aug,
                                   dimension_numbers=(((1,), (1,)), ((), ())),
                                   preferred_element_type=jnp.float32)      # [1,N]
            e = ad_col + as_r                                               # e[dst,src]
            e = jnp.maximum(e, 0.2 * e)                                     # LeakyReLU(0.2)
            e = e + adj_bias                                                # mask non-edges
            m = jnp.max(e, axis=-1, keepdims=True)
            p = jnp.exp(e - m)                # masked entries underflow to exactly 0
            inv = pl.reciprocal(jnp.sum(p, axis=-1, keepdims=True), approx=True)
            att = p * inv                                                   # softmax
            # Aggregate full-width; the stray score lane is annihilated by the
            # zero rows of the next weight block.
            agg = jnp.dot(att, h_aug, preferred_element_type=jnp.float32)   # [N,128]
            return agg + p_ref[b_row:b_row + 1, :].astype(jnp.float32)

        h1 = jnp.maximum(gat(x_ref[...], _R_W1, _R_A1S, _R_B1, hidden, True), 0.0)
        # TODO(synk): F.dropout (training mode) not implemented -> identity.
        h2 = gat(h1, _R_W2, _R_A2S, _R_B2, latent, False)
        z = (jnp.dot(h2, p_ref[_R_W3:_R_W3 + LANES, :].astype(jnp.float32),
                     preferred_element_type=jnp.float32)
             + p_ref[_R_B3:_R_B3 + 1, :].astype(jnp.float32))               # [N,128]
        # global_mean_pool as matmul; output is a lane-dense (Gpad,128) slab.
        out_ref[...] = jnp.dot(pool_ref[...], z,
                               preferred_element_type=jnp.float32)

    return kernel


# ---------------------------------------------------------------------------
# Jitted hot path: one pallas_call over the batch grid, slice kept inside jit
# ---------------------------------------------------------------------------
@functools.partial(jax.jit, static_argnames=("num_graphs", "hidden", "latent"))
def mmcl_attr_forward(x_bf, adj_bias, pool, slab, *, num_graphs, hidden, latent):
    B, n_pad, _ = x_bf.shape
    g_pad = pool.shape[1]
    out = pl.pallas_call(
        _make_kernel(hidden, latent),
        grid=(B,),
        out_shape=jax.ShapeDtypeStruct((B, g_pad, LANES), jnp.float32),
        in_specs=[
            pl.BlockSpec((None, n_pad, LANES), lambda b: (b, 0, 0)),    # x (bf16)
            pl.BlockSpec((None, n_pad, n_pad), lambda b: (b, 0, 0)),    # adj bias (bf16)
            pl.BlockSpec((None, g_pad, n_pad), lambda b: (b, 0, 0)),    # pool (f32)
            pl.BlockSpec((_SLAB_ROWS, LANES), lambda b: (0, 0)),        # params: resident
        ],
        out_specs=pl.BlockSpec((None, g_pad, LANES), lambda b: (b, 0, 0)),
        compiler_params=pltpu.CompilerParams(
            dimension_semantics=("parallel",)),   # megacore split on v7x
    )(x_bf, adj_bias, pool, slab)
    return out[:, :num_graphs, :latent]


# ---------------------------------------------------------------------------
# One-time host-side prep (results are cached on device across calls)
# ---------------------------------------------------------------------------
def _bf16_roundtrip(a):
    return jnp.asarray(a, jnp.bfloat16).astype(jnp.float32)


def pack_param_slab(params, in_ch, hidden, latent):
    """Pack all parameters into one bf16 [SLAB_ROWS,128] slab.  Call ONCE."""
    assert in_ch <= LANES and hidden + 1 <= LANES and latent + 1 <= LANES
    # round params to bf16 first so the final slab cast is lossless
    p = {k: np.asarray(_bf16_roundtrip(v), np.float32) for k, v in params.items()}
    slab = np.zeros((_SLAB_ROWS, LANES), np.float32)
    slab[_R_W1:_R_W1 + in_ch, :hidden] = p["w1"]
    slab[_R_W1:_R_W1 + in_ch, hidden:hidden + 1] = p["w1"] @ p["a1d"].T   # fold a_dst
    slab[_R_W2:_R_W2 + hidden, :latent] = p["w2"]
    slab[_R_W2:_R_W2 + hidden, latent:latent + 1] = p["w2"] @ p["a2d"].T  # fold a_dst
    slab[_R_W3:_R_W3 + latent, :latent] = p["w3"]
    slab[_R_B1, :hidden] = p["b1"][0]
    slab[_R_B2, :latent] = p["b2"][0]
    slab[_R_B3, :latent] = p["b3"][0]
    slab[_R_A1S, :hidden] = p["a1s"][0]
    slab[_R_A2S, :latent] = p["a2s"][0]
    return jnp.asarray(slab, dtype=jnp.bfloat16)


def build_graph_inputs(xs, edge_indices, batches, num_graphs, in_ch):
    """Dense graph tensors for B graph-batches.  Built once per graph
    structure (cacheable); the per-step hot path is only mmcl_attr_forward."""
    B = len(xs)
    n = np.asarray(xs[0]).shape[0]
    n_pad = _round_up(n, 16)                     # bf16 sublane tile; use 128 for large N
    g_pad = _round_up(max(num_graphs, 1), 8)     # f32 (8,128) output tile
    x_pad = np.zeros((B, n_pad, LANES), np.float32)
    adj_b = np.full((B, n_pad, n_pad), _NEG_INF, np.float32)   # additive mask
    pool = np.zeros((B, g_pad, n_pad), np.float32)
    for b in range(B):
        xb = np.asarray(xs[b], np.float32)
        ei = np.asarray(edge_indices[b])
        bt = np.asarray(batches[b])
        x_pad[b, :n, :in_ch] = xb
        adj_b[b, ei[1], ei[0]] = 0.0                            # edges dst<-src
        adj_b[b, np.arange(n), np.arange(n)] = 0.0              # self-loops
        counts = np.bincount(bt, minlength=num_graphs).astype(np.float32)
        pool[b, bt, np.arange(n)] = 1.0 / counts[bt]            # mean pooling
    return (jnp.asarray(x_pad, jnp.bfloat16),
            jnp.asarray(adj_b, jnp.bfloat16),
            jnp.asarray(pool, jnp.float32))


# ---------------------------------------------------------------------------
# Pure-JAX reference (unfolded parameters, exact divide; f32 math on the
# bf16-rounded inputs the kernel actually consumes)
# ---------------------------------------------------------------------------
def _ref_gat(h_in, W, a_s, a_d, b, adj):
    h = h_in @ W
    e = (h @ a_d.T) + (h @ a_s.T).T
    e = jnp.where(e > 0, e, 0.2 * e)
    e = jnp.where(adj > 0, e, -1e30)
    p = jnp.where(adj > 0, jnp.exp(e - e.max(-1, keepdims=True)), 0.0)
    att = p / p.sum(-1, keepdims=True)
    return att @ h + b


def _ref_forward(x, adj, pool, params):
    h1 = jnp.maximum(_ref_gat(x, params["w1"], params["a1s"], params["a1d"],
                              params["b1"], adj), 0.0)
    h2 = _ref_gat(h1, params["w2"], params["a2s"], params["a2d"],
                  params["b2"], adj)
    z = h2 @ params["w3"] + params["b3"]
    return pool @ z


# ---------------------------------------------------------------------------
# Main
# ---------------------------------------------------------------------------
if __name__ == "__main__":
    B = 4            # graph-batches going through one gridded pallas_call
    N = 16           # nodes per graph-batch
    IN_CH = 4        # in_channels
    HIDDEN = 32      # hidden_dim
    LATENT = 32      # latent_dim
    G = 2            # graphs per batch
    EDGE_DIM = 8     # edge_attr feature dim (ignored by GATConv w/o edge_dim)

    key = jax.random.PRNGKey(0)
    keys = jax.random.split(key, 20)

    # --- graph inputs: per batch, two 8-node bidirectional rings
    #     (odd batches additionally get stride-2 chords) ---
    xs, edge_indices, batches, edge_attrs = [], [], [], []
    for b in range(B):
        src, dst = [], []
        for g in range(G):
            for i in range(8):
                a_ = g * 8 + i
                c_ = g * 8 + (i + 1) % 8
                src += [a_, c_]
                dst += [c_, a_]
            if b % 2 == 1:
                for i in range(8):
                    src += [g * 8 + i]
                    dst += [g * 8 + (i + 2) % 8]
        ei = np.stack([np.array(src), np.array(dst)], axis=0)   # [2,E_b]
        edge_indices.append(ei)
        batches.append(np.array([0] * 8 + [1] * 8, dtype=np.int32))
        xs.append(jax.random.normal(keys[b], (N, IN_CH), dtype=jnp.float32))
        edge_attrs.append(jax.random.normal(keys[4 + b], (ei.shape[1], EDGE_DIM),
                                            dtype=jnp.float32))  # accepted, ignored

    # --- parameters (deterministic synthetic init; weights pre-transposed) ---
    s = 0.1
    pk = jax.random.split(keys[10], 10)
    params = {
        "w1":  s * jax.random.normal(pk[0], (IN_CH, HIDDEN), dtype=jnp.float32),
        "a1s": s * jax.random.normal(pk[1], (1, HIDDEN), dtype=jnp.float32),
        "a1d": s * jax.random.normal(pk[2], (1, HIDDEN), dtype=jnp.float32),
        "b1":  s * jax.random.normal(pk[3], (1, HIDDEN), dtype=jnp.float32),
        "w2":  s * jax.random.normal(pk[4], (HIDDEN, LATENT), dtype=jnp.float32),
        "a2s": s * jax.random.normal(pk[5], (1, LATENT), dtype=jnp.float32),
        "a2d": s * jax.random.normal(pk[6], (1, LATENT), dtype=jnp.float32),
        "b2":  s * jax.random.normal(pk[7], (1, LATENT), dtype=jnp.float32),
        "w3":  s * jax.random.normal(pk[8], (LATENT, LATENT), dtype=jnp.float32),
        "b3":  s * jax.random.normal(pk[9], (1, LATENT), dtype=jnp.float32),
    }

    # --- one-time prep, cached on device across calls ---
    slab = pack_param_slab(params, IN_CH, HIDDEN, LATENT)
    x_bf, adj_bias, pool = build_graph_inputs(xs, edge_indices, batches, G, IN_CH)
    # edge_attrs is accepted but unused: GATConv built without edge_dim ignores it.

    # --- jitted hot path: one gridded pallas_call for all B graph-batches ---
    out = mmcl_attr_forward(x_bf, adj_bias, pool, slab,
                            num_graphs=G, hidden=HIDDEN, latent=LATENT)
    out = jax.block_until_ready(out)
    assert out.shape == (B, G, LATENT)

    # --- verify against pure-JAX reference (unfolded math, exact divide) ---
    params_bf = {k: _bf16_roundtrip(v) for k, v in params.items()}
    refs = []
    for b in range(B):
        ei = edge_indices[b]
        bt = batches[b]
        adj_np = np.zeros((N, N), dtype=np.float32)
        adj_np[ei[1], ei[0]] = 1.0
        adj_np[np.arange(N), np.arange(N)] = 1.0
        counts = np.bincount(bt, minlength=G).astype(np.float32)
        pool_np = np.zeros((G, N), dtype=np.float32)
        pool_np[bt, np.arange(N)] = 1.0 / counts[bt]
        x_b = _bf16_roundtrip(xs[b])                 # same rounding the kernel sees
        refs.append(_ref_forward(x_b, jnp.asarray(adj_np), jnp.asarray(pool_np),
                                 params_bf))
    ref = jax.block_until_ready(jnp.stack(refs, axis=0))

    np.testing.assert_allclose(np.asarray(out), np.asarray(ref),
                               rtol=1e-2, atol=1.5e-3)
    print("KERNEL_OK")
</pallas_src>

<mosaic_0001>
module attributes {stable_mosaic.version = 11 : i64} {
  func.func @kernel(%arg0: i32, %arg1: memref<1x16x128xbf16, #tpu.memory_space<vmem>>, %arg2: memref<1x16x16xbf16, #tpu.memory_space<vmem>>, %arg3: memref<1x8x16xf32, #tpu.memory_space<vmem>>, %arg4: memref<432x128xbf16, #tpu.memory_space<vmem>>, %arg5: memref<1x8x128xf32, #tpu.memory_space<vmem>>) attributes {dimension_semantics = [#tpu.dimension_semantics<parallel>], iteration_bounds = array<i64: 4>, scalar_prefetch = 0 : i64, scratch_operands = 0 : i64, tpu.core_type = #tpu.core_type<tc>, window_params = [{transform_indices = @transform_0, window_bounds = array<i64: 1, 16, 128>}, {transform_indices = @transform_1, window_bounds = array<i64: 1, 16, 16>}, {transform_indices = @transform_2, window_bounds = array<i64: 1, 8, 16>}, {pipeline_mode = #tpu.pipeline_mode<synchronous>, transform_indices = @transform_3, window_bounds = array<i64: 432, 128>}, {transform_indices = @transform_4, window_bounds = array<i64: 1, 8, 128>}]} {
    %c0 = arith.constant 0 : index
    %c0_0 = arith.constant 0 : index
    %c0_1 = arith.constant 0 : index
    %0 = vector.load %arg2[%c0, %c0_0, %c0_1] : memref<1x16x16xbf16, #tpu.memory_space<vmem>>, vector<1x16x16xbf16>
    %1 = vector.shape_cast %0 : vector<1x16x16xbf16> to vector<16x16xbf16>
    %2 = arith.extf %1 : vector<16x16xbf16> to vector<16x16xf32>
    %c0_2 = arith.constant 0 : index
    %c0_3 = arith.constant 0 : index
    %c0_4 = arith.constant 0 : index
    %3 = vector.load %arg1[%c0_2, %c0_3, %c0_4] : memref<1x16x128xbf16, #tpu.memory_space<vmem>>, vector<1x16x128xbf16>
    %4 = vector.shape_cast %3 : vector<1x16x128xbf16> to vector<16x128xbf16>
    %c0_5 = arith.constant 0 : index
    %c0_6 = arith.constant 0 : index
    %5 = vector.load %arg4[%c0_5, %c0_6] : memref<432x128xbf16, #tpu.memory_space<vmem>>, vector<128x128xbf16>
    %cst = arith.constant dense<0.000000e+00> : vector<16x128xf32>
    %6 = tpu.matmul %4, %5, %cst {dimension_numbers = #tpu.dot_dimension_numbers<[1], [0], [0], [1], [0, 0, 1, 1], [], []>} : vector<16x128xbf16>, vector<128x128xbf16>, vector<16x128xf32> -> vector<16x128xf32>
    %7 = vector.extract_strided_slice %6 {offsets = [0, 32], sizes = [16, 1], strides = [1, 1]} : vector<16x128xf32> to vector<16x1xf32>
    %c408 = arith.constant 408 : index
    %c0_7 = arith.constant 0 : index
    %8 = vector.load %arg4[%c408, %c0_7] : memref<432x128xbf16, #tpu.memory_space<vmem>>, vector<1x128xbf16>
    %9 = arith.extf %8 : vector<1x128xbf16> to vector<1x128xf32>
    %cst_8 = arith.constant dense<0.000000e+00> : vector<1x16xf32>
    %10 = tpu.matmul %9, %6, %cst_8 {dimension_numbers = #tpu.dot_dimension_numbers<[1], [1], [0], [0], [0, 0, 1, 0], [], []>} : vector<1x128xf32>, vector<16x128xf32>, vector<1x16xf32> -> vector<1x16xf32>
    %11 = vector.broadcast %7 : vector<16x1xf32> to vector<16x16xf32>
    %12 = vector.broadcast %10 : vector<1x16xf32> to vector<16x16xf32>
    %13 = arith.addf %11, %12 : vector<16x16xf32>
    %cst_9 = arith.constant 2.000000e-01 : f32
    %14 = vector.broadcast %cst_9 : f32 to vector<16x16xf32>
    %15 = arith.mulf %14, %13 : vector<16x16xf32>
    %16 = arith.maximumf %13, %15 : vector<16x16xf32>
    %17 = arith.addf %16, %2 : vector<16x16xf32>
    %cst_10 = arith.constant dense<0xFF800000> : vector<16xf32>
    %18 = vector.multi_reduction <maximumf>, %17, %cst_10 [1] : vector<16x16xf32> to vector<16xf32>
    %19 = vector.shape_cast %18 : vector<16xf32> to vector<16x1xf32>
    %20 = vector.broadcast %19 : vector<16x1xf32> to vector<16x16xf32>
    %21 = arith.subf %17, %20 : vector<16x16xf32>
    %22 = math.exp %21 : vector<16x16xf32>
    %cst_11 = arith.constant dense<0.000000e+00> : vector<16xf32>
    %23 = vector.multi_reduction <add>, %22, %cst_11 [1] : vector<16x16xf32> to vector<16xf32>
    %24 = vector.shape_cast %23 : vector<16xf32> to vector<16x1xf32>
    %25 = tpu.reciprocal %24 {approx = true} : vector<16x1xf32> -> vector<16x1xf32>
    %26 = vector.broadcast %25 : vector<16x1xf32> to vector<16x16xf32>
    %27 = arith.mulf %22, %26 : vector<16x16xf32>
    %cst_12 = arith.constant dense<0.000000e+00> : vector<16x128xf32>
    %28 = tpu.matmul %27, %6, %cst_12 {dimension_numbers = #tpu.dot_dimension_numbers<[1], [0], [0], [1], [0, 0, 1, 1], [], []>} : vector<16x16xf32>, vector<16x128xf32>, vector<16x128xf32> -> vector<16x128xf32>
    %c384 = arith.constant 384 : index
    %c0_13 = arith.constant 0 : index
    %29 = vector.load %arg4[%c384, %c0_13] : memref<432x128xbf16, #tpu.memory_space<vmem>>, vector<1x128xbf16>
    %30 = arith.extf %29 : vector<1x128xbf16> to vector<1x128xf32>
    %31 = vector.broadcast %30 : vector<1x128xf32> to vector<16x128xf32>
    %32 = arith.addf %28, %31 : vector<16x128xf32>
    %cst_14 = arith.constant 0.000000e+00 : f32
    %33 = vector.broadcast %cst_14 : f32 to vector<16x128xf32>
    %34 = arith.maximumf %32, %33 : vector<16x128xf32>
    %c128 = arith.constant 128 : index
    %c0_15 = arith.constant 0 : index
    %35 = vector.load %arg4[%c128, %c0_15] : memref<432x128xbf16, #tpu.memory_space<vmem>>, vector<128x128xbf16>
    %36 = arith.extf %35 : vector<128x128xbf16> to vector<128x128xf32>
    %cst_16 = arith.constant dense<0.000000e+00> : vector<16x128xf32>
    %37 = tpu.matmul %34, %36, %cst_16 {dimension_numbers = #tpu.dot_dimension_numbers<[1], [0], [0], [1], [0, 0, 1, 1], [], []>} : vector<16x128xf32>, vector<128x128xf32>, vector<16x128xf32> -> vector<16x128xf32>
    %38 = vector.extract_strided_slice %37 {offsets = [0, 32], sizes = [16, 1], strides = [1, 1]} : vector<16x128xf32> to vector<16x1xf32>
    %c416 = arith.constant 416 : index
    %c0_17 = arith.constant 0 : index
    %39 = vector.load %arg4[%c416, %c0_17] : memref<432x128xbf16, #tpu.memory_space<vmem>>, vector<1x128xbf16>
    %40 = arith.extf %39 : vector<1x128xbf16> to vector<1x128xf32>
    %cst_18 = arith.constant dense<0.000000e+00> : vector<1x16xf32>
    %41 = tpu.matmul %40, %37, %cst_18 {dimension_numbers = #tpu.dot_dimension_numbers<[1], [1], [0], [0], [0, 0, 1, 0], [], []>} : vector<1x128xf32>, vector<16x128xf32>, vector<1x16xf32> -> vector<1x16xf32>
    %42 = vector.broadcast %38 : vector<16x1xf32> to vector<16x16xf32>
    %43 = vector.broadcast %41 : vector<1x16xf32> to vector<16x16xf32>
    %44 = arith.addf %42, %43 : vector<16x16xf32>
    %cst_19 = arith.constant 2.000000e-01 : f32
    %45 = vector.broadcast %cst_19 : f32 to vector<16x16xf32>
    %46 = arith.mulf %45, %44 : vector<16x16xf32>
    %47 = arith.maximumf %44, %46 : vector<16x16xf32>
    %48 = arith.addf %47, %2 : vector<16x16xf32>
    %cst_20 = arith.constant dense<0xFF800000> : vector<16xf32>
    %49 = vector.multi_reduction <maximumf>, %48, %cst_20 [1] : vector<16x16xf32> to vector<16xf32>
    %50 = vector.shape_cast %49 : vector<16xf32> to vector<16x1xf32>
    %51 = vector.broadcast %50 : vector<16x1xf32> to vector<16x16xf32>
    %52 = arith.subf %48, %51 : vector<16x16xf32>
    %53 = math.exp %52 : vector<16x16xf32>
    %cst_21 = arith.constant dense<0.000000e+00> : vector<16xf32>
    %54 = vector.multi_reduction <add>, %53, %cst_21 [1] : vector<16x16xf32> to vector<16xf32>
    %55 = vector.shape_cast %54 : vector<16xf32> to vector<16x1xf32>
    %56 = tpu.reciprocal %55 {approx = true} : vector<16x1xf32> -> vector<16x1xf32>
    %57 = vector.broadcast %56 : vector<16x1xf32> to vector<16x16xf32>
    %58 = arith.mulf %53, %57 : vector<16x16xf32>
    %cst_22 = arith.constant dense<0.000000e+00> : vector<16x128xf32>
    %59 = tpu.matmul %58, %37, %cst_22 {dimension_numbers = #tpu.dot_dimension_numbers<[1], [0], [0], [1], [0, 0, 1, 1], [], []>} : vector<16x16xf32>, vector<16x128xf32>, vector<16x128xf32> -> vector<16x128xf32>
    %c392 = arith.constant 392 : index
    %c0_23 = arith.constant 0 : index
    %60 = vector.load %arg4[%c392, %c0_23] : memref<432x128xbf16, #tpu.memory_space<vmem>>, vector<1x128xbf16>
    %61 = arith.extf %60 : vector<1x128xbf16> to vector<1x128xf32>
    %62 = vector.broadcast %61 : vector<1x128xf32> to vector<16x128xf32>
    %63 = arith.addf %59, %62 : vector<16x128xf32>
    %c256 = arith.constant 256 : index
    %c0_24 = arith.constant 0 : index
    %64 = vector.load %arg4[%c256, %c0_24] : memref<432x128xbf16, #tpu.memory_space<vmem>>, vector<128x128xbf16>
    %65 = arith.extf %64 : vector<128x128xbf16> to vector<128x128xf32>
    %cst_25 = arith.constant dense<0.000000e+00> : vector<16x128xf32>
    %66 = tpu.matmul %63, %65, %cst_25 {dimension_numbers = #tpu.dot_dimension_numbers<[1], [0], [0], [1], [0, 0, 1, 1], [], []>} : vector<16x128xf32>, vector<128x128xf32>, vector<16x128xf32> -> vector<16x128xf32>
    %c400 = arith.constant 400 : index
    %c0_26 = arith.constant 0 : index
    %67 = vector.load %arg4[%c400, %c0_26] : memref<432x128xbf16, #tpu.memory_space<vmem>>, vector<1x128xbf16>
    %68 = arith.extf %67 : vector<1x128xbf16> to vector<1x128xf32>
    %69 = vector.broadcast %68 : vector<1x128xf32> to vector<16x128xf32>
    %70 = arith.addf %66, %69 : vector<16x128xf32>
    %c0_27 = arith.constant 0 : index
    %c0_28 = arith.constant 0 : index
    %c0_29 = arith.constant 0 : index
    %71 = vector.load %arg3[%c0_27, %c0_28, %c0_29] : memref<1x8x16xf32, #tpu.memory_space<vmem>>, vector<1x8x16xf32>
    %72 = vector.shape_cast %71 : vector<1x8x16xf32> to vector<8x16xf32>
    %cst_30 = arith.constant dense<0.000000e+00> : vector<8x128xf32>
    %73 = tpu.matmul %72, %70, %cst_30 {dimension_numbers = #tpu.dot_dimension_numbers<[1], [0], [0], [1], [0, 0, 1, 1], [], []>} : vector<8x16xf32>, vector<16x128xf32>, vector<8x128xf32> -> vector<8x128xf32>
    %c0_31 = arith.constant 0 : index
    %c0_32 = arith.constant 0 : index
    %c0_33 = arith.constant 0 : index
    %74 = vector.load %arg5[%c0_31, %c0_32, %c0_33] : memref<1x8x128xf32, #tpu.memory_space<vmem>>, vector<1x8x128xf32>
    %75 = vector.shape_cast %74 : vector<1x8x128xf32> to vector<8x128xf32>
    %76 = vector.shape_cast %73 : vector<8x128xf32> to vector<1x8x128xf32>
    tpu.vector_store %arg5[%c0_31, %c0_32, %c0_33], %76 {strides = array<i32>} : memref<1x8x128xf32, #tpu.memory_space<vmem>>, vector<1x8x128xf32>,
    return
  }
  func.func @transform_0(%arg0: i32) -> (i32, i32, i32) {
    %c0_i32 = arith.constant 0 : i32
    %c0_i32_0 = arith.constant 0 : i32
    %c0_i32_1 = arith.constant 0 : i32
    return %arg0, %c0_i32, %c0_i32_0 : i32, i32, i32
  }
  func.func @transform_1(%arg0: i32) -> (i32, i32, i32) {
    %c0_i32 = arith.constant 0 : i32
    %c0_i32_0 = arith.constant 0 : i32
    %c0_i32_1 = arith.constant 0 : i32
    return %arg0, %c0_i32, %c0_i32_0 : i32, i32, i32
  }
  func.func @transform_2(%arg0: i32) -> (i32, i32, i32) {
    %c0_i32 = arith.constant 0 : i32
    %c0_i32_0 = arith.constant 0 : i32
    %c0_i32_1 = arith.constant 0 : i32
    return %arg0, %c0_i32, %c0_i32_0 : i32, i32, i32
  }
  func.func @transform_3(%arg0: i32) -> (i32, i32) {
    %c0_i32 = arith.constant 0 : i32
    %c0_i32_0 = arith.constant 0 : i32
    %c0_i32_1 = arith.constant 0 : i32
    return %c0_i32, %c0_i32_0 : i32, i32
  }
  func.func @transform_4(%arg0: i32) -> (i32, i32, i32) {
    %c0_i32 = arith.constant 0 : i32
    %c0_i32_0 = arith.constant 0 : i32
    %c0_i32_1 = arith.constant 0 : i32
    return %arg0, %c0_i32, %c0_i32_0 : i32, i32, i32
  }
}

</mosaic_0001>

<bundles_post_ra>
// kernel: mmcl_attr_forward.1
= control target key start
LH: loop header
LB: loop body
LE: loop exit
PB: predicated region body
PF: predicated region fallthrough
CT: control target
= control target key end

     0   :  { %9 = vsyncpa [#allocation3], 0  ;;  %s2222_s0 = inlined_call_operand.hbm [shape: bf16[4,16,128], index: 0, kind: input, shape index: {}]   ;;  %s2223_s1 = inlined_call_operand.hbm [shape: bf16[4,16,16], index: 1, kind: input, shape index: {}]   ;;  %s2224_s2 = inlined_call_operand.hbm [shape: f32[4,8,16], index: 2, kind: input, shape index: {}]   ;;  %s2225_s3 = inlined_call_operand.hbm [shape: bf16[432,128], index: 3, kind: input, shape index: {}]   ;;  %s2226_s4 = inlined_call_operand.vmem [shape: f32[4,8,128], index: 4, kind: output, shape index: {}]  }
   0x1   :  { %11 = vsyncpa [#allocation3 + $0x1], 0 }
   0x2   :  { %12 = vsyncpa [#allocation5], 0 }
   0x3   :  { %14 = vsyncpa [#allocation5 + $0x1], 0 }
   0x4   :  { %15 = vsyncpa [#allocation8], 0  ;;  %s1923_s15 = smov 0   ;;  %s1925_s16 = smov 0  }
   0x5   :  { %s1927_s17 = smov 0   ;;  %s1929_s18 = smov 0  }
   0x6 LB: > { %s1944_s19 = sadd.s32 1, %s1886_s18   ;;  %s28_s20 = sadd.s32 1, %s1882_s17  ;;  %s1886_s18 = sphi %s1929_s18, %s2249_s18   ;;  %s1882_s17 = sphi %s1927_s17, %s2248_s17   ;;  %s1878_s16 = sphi %s1925_s16, %s2247_s16   ;;  %s1874_s15 = sphi %s1923_s15, %s2246_s15  }
   0x7   : > { %s25_s21 = ssub.s32 %s1886_s18, %s1944_s19  ;;  %p35_p0 = scmp.ne.s32.totalorder %s1882_s17, %s1878_s16 }
   0x8   : > { %p26_p1 = scmp.eq.s32.totalorder %s25_s21, 0  ;;  %p36_p2 = scmp.eq.s32.totalorder %s1886_s18, 0 }
   0x9   : > { %p1658_p4 = scmp.lt.s32.totalorder %s1886_s18, 4  ;;  %s177_s23 = sand.u32 1, %s1882_s17  }
   0xa   : > { %s1953_s22 = scalar_select %p26_p1, %s1882_s17, %s28_s20  }
   0xb   : > { %p37_p3 = por %p36_p2, %p35_p0  ;;  %s1959_s24 = sshll.u32 %s177_s23, 3 }
   0xc   : > { %s1962_s25 = sshll.u32 %s1886_s18, 7  ;;  %s198_s27 = sand.u32 1, %s1886_s18  }
   0xd   : > { %p1964_p5 = pnand %p1658_p4, %p37_p3  ;;  %s1973_s30 = scalar_lea.hbm %s2223_s1, %s1962_s25 }
   0xe   : > { %s202_s5 = scalar_lea.vmem [#allocation4], %s1959_s24  ;;  %s1978_s7 = scalar_lea.sflag [#allocation5], %s198_s27 }
   0xf   : > { %s2234_s26 = scalar_select %p1964_p5, 1, 0 }
  0x10   : > { %s209_s6 = sshll.u32 %s202_s5, 4  ;;  %s1726_s8 = scalar_lea.hbm %s1973_s30, 128  ;;  %s1976_s6 = int_to_ptr.vmem [resolvable:$true] %s209_s6 }
  0x11   : > { %p1727_p6 = scmp.ne.s32.totalorder %s1973_s30, %s1726_s8  ;;  %p1984_p7 = pneg %p1964_p5 }
  0x12   : > { %s1731_s12 = scalar_lea.hbm %s2223_s1, 512  ;;  %p1732_p10 = scmp.lt.u32.totalorder %s1973_s30, %s2223_s1 }
  0x13   : > { %s2235_s9 = scalar_select %p1984_p7, 1, 0 }
  0x14   : > { %p1729_p8 = pnand %p1984_p7, %p1727_p6  ;;  %p1733_p11 = scmp.lt.u32.totalorder %s1731_s12, %s1726_s8 }
  0x15   : > { %p1735_p13 = scmp.lt.u32.totalorder %s1726_s8, %s1973_s30 }
  0x16   : > { %p1730_p9 = pneg %p1729_p8  ;;  %p1734_p12 = por %p1733_p11, %p1732_p10 }
  0x18   : > { %p1736_p0 = por %p1735_p13, %p1734_p12 }
  0x1a   : > { %p1737_p1 = pnand %p1736_p0, %p1730_p9 }
  0x1c   : > { %1740 = shalt.err (!%p1737_p1)
}
  0x1d   : > { %s1741_s20 = scalar_lea.vmem %s1976_s6, 128  ;;  %s1888_s21 = smov [#allocation4]  }
  0x1e   : > { %p1742_p2 = scmp.ne.s32.totalorder %s1976_s6, %s1741_s20  ;;  %s1746_s27 = sshll.u32 %s1888_s21, 4  ;;  %s1747_s27 = int_to_ptr.vmem [resolvable:$false] %s1746_s27 }
  0x1f   : > { %s1748_s28 = scalar_lea.vmem %s1747_s27, 256  ;;  %p1749_p6 = scmp.lt.s32.totalorder %s1976_s6, %s1747_s27 }
  0x20   : > { %p1744_p3 = pnand %p1742_p2, %p1984_p7  ;;  %p1750_p8 = scmp.lt.s32.totalorder %s1748_s28, %s1741_s20 }
  0x22   : > { %p1745_p4 = pneg %p1744_p3  ;;  %p1751_p10 = por %p1750_p8, %p1749_p6 }
  0x24   : > { %p1752_p11 = pnand %p1751_p10, %p1745_p4 }
  0x26   : > { %1755 = shalt.err (!%p1752_p11)
}
  0x27   : > { %s1889_s29 = smov 64   ;;  %s1890_s5 = smov 4  }
  0x28   : > { %1653 = dma.hbm_to_vmem [thread:$0]  (!%p1964_p5), %s1973_s30, 128, %s1976_s6, %s1978_s7, %s1889_s29, %s1889_s29, %s1890_s5  }
  0x29   : > { %s2012_s8 = sadd.s32 4294967295, %s1886_s18   ;;  %p41_p9 = scmp.ne.s32.totalorder %s1878_s16, %s1874_s15 }
  0x2a   : > { %p2227_p12 = scmp.eq.s32.totalorder %s2012_s8, 0  ;;  %p1246_p13 = scmp.ge.s32.totalorder %s1886_s18, 1 }
  0x2b   : > { %p151_p0 = scmp.lt.s32.totalorder %s1886_s18, 5  ;;  %s1891_s30 = smov [#allocation7]  }
  0x2c   : > { %p2021_p1 = por %p2227_p12, %p41_p9  ;;  %s163_s6 = sshll.u32 %s1891_s30, 4  ;;  %s2029_s6 = int_to_ptr.vmem [resolvable:$true] %s163_s6 }
  0x2d   : > { %p2025_p2 = pnand %p1246_p13, %p151_p0  ;;  %s2037_s18 = scalar_lea.hbm %s2222_s0, %s1962_s25 }
  0x2e   : > { %s2236_s10 = scalar_select %p2021_p1, 1, 0 }
  0x2f   : > { %s2237_s11 = scalar_select %p2025_p2, 1, 0 }
  0x30   : > { %p1643_p3 = pneg %p2025_p2  ;;  %s181_s13 = scalar_lea.vmem [#allocation2], %s1959_s24 }
  0x31   : > { %s188_s14 = sshll.u32 %s181_s13, 4  ;;  %s2050_s21 = scalar_lea.sflag [#allocation3], %s177_s23  ;;  %s2046_s14 = int_to_ptr.vmem [resolvable:$true] %s188_s14 }
  0x32   : > { %p2042_p4 = pnand %p1643_p3, %p2227_p12  ;;  %s1756_s27 = scalar_lea.hbm %s2037_s18, 128 }
  0x33   : > { %p1757_p6 = scmp.ne.s32.totalorder %s2037_s18, %s1756_s27  ;;  %s1761_s15 = scalar_lea.hbm %s2222_s0, 512 }
  0x34   : > { %s2238_s20 = scalar_select %p2042_p4, 1, 0 }
  0x35   : > { %p1759_p8 = pnand %p1757_p6, %p1984_p7  ;;  %p1762_p11 = scmp.lt.u32.totalorder %s2037_s18, %s2222_s0 }
  0x36   : > { %p1763_p9 = scmp.lt.u32.totalorder %s1761_s15, %s1756_s27  ;;  %p1765_p0 = scmp.lt.u32.totalorder %s1756_s27, %s2037_s18 }
  0x37   : > { %p1760_p10 = pneg %p1759_p8 }
  0x38   : > { %p1764_p13 = por %p1763_p9, %p1762_p11 }
  0x3a   : > { %p1766_p3 = por %p1765_p0, %p1764_p13 }
  0x3c   : > { %p1767_p12 = pnand %p1766_p3, %p1760_p10 }
  0x3e   : > { %1770 = shalt.err (!%p1767_p12)
}
  0x3f   : > { %s1771_s23 = scalar_lea.vmem %s2046_s14, 128  ;;  %s1892_s28 = smov [#allocation2]  }
  0x40   : > { %p1772_p6 = scmp.ne.s32.totalorder %s2046_s14, %s1771_s23  ;;  %s1776_s30 = sshll.u32 %s1892_s28, 4  ;;  %s1777_s30 = int_to_ptr.vmem [resolvable:$false] %s1776_s30 }
  0x41   : > { %s1778_s12 = scalar_lea.vmem %s1777_s30, 256  ;;  %p1779_p2 = scmp.lt.s32.totalorder %s2046_s14, %s1777_s30 }
  0x42   : > { %p1774_p8 = pnand %p1772_p6, %p1984_p7  ;;  %p1780_p4 = scmp.lt.s32.totalorder %s1778_s12, %s1771_s23 }
  0x44   : > { %p1775_p1 = pneg %p1774_p8  ;;  %p1781_p11 = por %p1780_p4, %p1779_p2 }
  0x46   : > { %p1782_p9 = pnand %p1781_p11, %p1775_p1 }
  0x48   : > { %1785 = shalt.err (!%p1782_p9)
}
  0x49   : > { %1650 = dma.hbm_to_vmem [thread:$0]  (!%p1964_p5), %s2037_s18, 128, %s2046_s14, %s2050_s21, %s1889_s29, %s1889_s29, %s1890_s5  }
  0x4a   : > { %s1786_s13 = scalar_lea.hbm %s2225_s3, 3456  ;;  %p2239_p1 = scmp.ne.s32.totalorder %s2238_s20, 0 }
  0x4b   : > { %p1787_p12 = scmp.ne.s32.totalorder %s2225_s3, %s1786_s13  ;;  %p1793_p13 = scmp.lt.u32.totalorder %s1786_s13, %s2225_s3 }
  0x4c   : > { %p1788_p2 = pneg %p2239_p1 }
  0x4e   : > { %p1789_p4 = pnand %p1788_p2, %p1787_p12 }
  0x50   : > { %p1790_p10 = pneg %p1789_p4 }
  0x52   : > { %p1795_p0 = pnand %p1793_p13, %p1790_p10 }
  0x54   : > { %1798 = shalt.err (!%p1795_p0)
}
  0x55   : > { %s1799_s18 = scalar_lea.vmem %s2029_s6, 3456  ;;  %p1807_p11 = scmp.lt.s32.totalorder %s2029_s6, %s2029_s6 }
  0x56   : > { %p1800_p3 = scmp.ne.s32.totalorder %s2029_s6, %s1799_s18  ;;  %p1808_p9 = scmp.lt.s32.totalorder %s1799_s18, %s1799_s18 }
  0x58   : > { %p1802_p6 = pnand %p1800_p3, %p1788_p2  ;;  %p1809_p5 = por %p1808_p9, %p1807_p11 }
  0x5a   : > { %p1803_p8 = pneg %p1802_p6 }
  0x5c   : > { %p1810_p7 = pnand %p1809_p5, %p1803_p8 }
  0x5e   : > { %1813 = shalt.err (!%p1810_p7)
}
  0x5f   : > { %1646 = dma.hbm_to_vmem [thread:$0]  (!%p2239_p1), %s2225_s3, 3456, %s2029_s6, [#allocation8], %s1889_s29, %s1889_s29, %s1890_s5  }
  0x60   : > { %s2105_s13 = scalar_lea.hbm %s2224_s2, %s1962_s25  ;;  %s223_s20 = scalar_lea.vmem [#allocation6], %s1959_s24 }
  0x61   : > { %s230_s28 = sshll.u32 %s223_s20, 4  ;;  %s1814_s30 = scalar_lea.hbm %s2105_s13, 128  ;;  %s231_s28 = int_to_ptr.vmem [resolvable:$true] %s230_s28 }
  0x62   : > { %p1815_p5 = scmp.ne.s32.totalorder %s2105_s13, %s1814_s30  ;;  %p2240_p7 = scmp.ne.s32.totalorder %s2235_s9, 0 }
  0x63   : > { %s1819_s29 = scalar_lea.hbm %s2224_s2, 512  ;;  %p1820_p1 = scmp.lt.u32.totalorder %s2105_s13, %s2224_s2 }
  0x64   : > { %p1817_p12 = pnand %p1815_p5, %p2240_p7  ;;  %p1821_p4 = scmp.lt.u32.totalorder %s1819_s29, %s1814_s30 }
  0x65   : > { %p1823_p13 = scmp.lt.u32.totalorder %s1814_s30, %s2105_s13 }
  0x66   : > { %p1818_p2 = pneg %p1817_p12  ;;  %p1822_p10 = por %p1821_p4, %p1820_p1 }
  0x68   : > { %p1824_p0 = por %p1823_p13, %p1822_p10 }
  0x6a   : > { %p1825_p3 = pnand %p1824_p0, %p1818_p2 }
  0x6c   : > { %1828 = shalt.err (!%p1825_p3)
}
  0x6d   : > { %s1829_s24 = scalar_lea.vmem %s231_s28, 128  ;;  %s1893_s25 = smov [#allocation6]  }
  0x6e   : > { %p1830_p6 = scmp.ne.s32.totalorder %s231_s28, %s1829_s24  ;;  %s1834_s18 = sshll.u32 %s1893_s25, 4  ;;  %s1835_s18 = int_to_ptr.vmem [resolvable:$false] %s1834_s18 }
  0x6f   : > { %s1836_s14 = scalar_lea.vmem %s1835_s18, 256  ;;  %p1837_p9 = scmp.lt.s32.totalorder %s231_s28, %s1835_s18 }
  0x70   : > { %p1832_p8 = pnand %p1830_p6, %p2240_p7  ;;  %p1838_p5 = scmp.lt.s32.totalorder %s1836_s14, %s1829_s24 }
  0x72   : > { %p1833_p11 = pneg %p1832_p8  ;;  %p1839_p12 = por %p1838_p5, %p1837_p9 }
  0x74   : > { %p1840_p1 = pnand %p1839_p12, %p1833_p11 }
  0x76   : > { %1843 = shalt.err (!%p1840_p1)
}
  0x77   : > { %p2241_p4 = scmp.ne.s32.totalorder %s2234_s26, 0  ;;  %p2242_p2 = scmp.ne.s32.totalorder %s2237_s11, 0 }
  0x78   : > { %s241_s9 = sand.u32 (!%p2242_p2), 1, %s1878_s16   ;;  %p2243_p7 = scmp.ne.s32.totalorder (!%p2242_p2), %s2236_s10, 0 }
  0x79   : > { %1656 = dma.hbm_to_vmem [thread:$0]  (!%p2241_p4), %s2105_s13, 128, %s231_s28, %s1978_s7  }
  0x7a   : > { %239 = sbr.rel (%p2242_p2) target bundleno = 2562 (0xa02), region = 36  ;;  %s2129_s21 = sshll.u32 (!%p2242_p2), %s241_s9, 3 }
  0x7b   : > { %s242_s27 = scalar_lea.sflag (!%p2242_p2), [#allocation3], %s241_s9  ;;  %s245_s15 = scalar_lea.vmem (!%p2242_p2), [#allocation2], %s2129_s21 }
  0x81   : > { %1861 = dma.done.wait (%p2243_p7), %s242_s27, 128  }
  0x82   : > { %1863 = vsyncadd (%p2243_p7), %s242_s27, 4294967168  ;;  %s250_s26 = sand.u32 1, %s2012_s8   ;;  %s254_s11 = scalar_lea.vmem [#allocation4], %s2129_s21 }
  0x83   : > { %s251_s7 = scalar_lea.sflag [#allocation5], %s250_s26 }
  0x84   : > { %1865 = dma.done.wait (%p2243_p7), %s251_s7, 256  }
  0x85   : > { %1867 = vsyncadd (%p2243_p7), %s251_s7, 4294967040  ;;  %s263_s13 = scalar_lea.vmem [#allocation6], %s2129_s21  ;;  %p2244_p10 = scmp.eq.s32.totalorder %s2012_s8, 0 }
  0x87   : > { %1869 = dma.done.wait (%p2244_p10), [#allocation8], 3456   ;;  %p2245_p13 = pmov %p2244_p10 }
  0x88   : > { %v1894_v0 = vmov 0.0   ;;  %vm1895_vm0 = vmmov 0   ;;  %v1896_v1 = vmov 32   ;;  %v1701_v2 = vld [vmem:[#allocation7] sm:$0xff]   ;;  %v1702_v3 = vld [vmem:[#allocation7 + $0x8] sm:$0xff]   ;;  %v1703_v4 = vld [vmem:[#allocation7 + $0x10] sm:$0xff]   ;;  %v505_v19 = vlaneseq }
  0x89   : > { %1871 = vsyncadd (%p2245_p13), [#allocation8], 4294963840  ;;  %1427 = vmatprep.subr.bf16.mxu0 %v1894_v0  ;;  %1443 = vmatprep.mubr.msk.bf16.mxu0 %vm1895_vm0, %v1894_v0  ;;  %v1704_v5 = vld [vmem:[#allocation7 + $0x18] sm:$0xff]   ;;  %v1705_v6 = vld [vmem:[#allocation7 + $0x20] sm:$0xff]   ;;  %v1897_v11 = vmov 0.0|0.0   ;;  %vm517_vm1 = vcmask 130048  }
  0x8a   : > { %1699 = vset.pattern.permute.xlu0 %v1896_v1  ;;  %1451 = vmatprep.mubr.msk.f32.mxu1 %vm1895_vm0, %v1894_v0  ;;  %v1706_v7 = vld [vmem:[#allocation7 + $0x28] sm:$0xff]   ;;  %v1707_v8 = vld [vmem:[#allocation7 + $0x30] sm:$0xff]   ;;  %v1708_v9 = vld [vmem:[#allocation7 + $0x38] sm:$0xff]   ;;  %v506_v20 = vshrl.u32 %v505_v19, 7  ;;  %p301_p0 = scmp.lt.s32.totalorder %s2012_s8, 3 }
  0x8b   : > { %1700 = vset.pattern.permute.xlu1 %v1896_v1  ;;  %1428 = vmatpush3.bf16.msra.mxu0 %v1701_v2  ;;  %v1709_v10 = vld [vmem:[%s245_s15] sm:$0xff]   ;;  %v423_v17 = vld [vmem:[#allocation7 + $0xcc] sm:$0x1]  ;;  %v1349_v50 = vld [vmem:[#allocation7 + $0x40] sm:$0xff]  }
  0x8c   : > { %1429 = vmatprep.subr.bf16.mxu0 %v1894_v0  ;;  %1552 = vmatprep.subr.bf16.mxu1 %v1897_v11  ;;  %v424_v18 = vunpack.c.l.bf16 %v423_v17  ;;  %v2162_v22 = vsub.s32 0, %v506_v20  ;;  %v2167_v27 = vld [vmem:[%s254_s11] sm:$0xff]   ;;  %v1351_v58 = vld [vmem:[#allocation7 + $0x50] sm:$0xff]   ;;  %v1352_v59 = vld [vmem:[#allocation7 + $0x58] sm:$0xff]   ;;  %s2251_s8 = smov (!%p301_p0, %s2012_s8), 3 }
  0x8d   : > { %v1283_v32 = vunpack.c.l.bf16 %v2167_v27  ;;  %v1284_v34 = vunpack.c.h.bf16 %v2167_v27  ;;  %v1350_v57 = vld [vmem:[#allocation7 + $0x48] sm:$0xff]   ;;  %v1353_v60 = vld [vmem:[#allocation7 + $0x60] sm:$0xff]   ;;  %v1355_v62 = vld [vmem:[#allocation7 + $0x70] sm:$0xff]   ;;  %s1262_s10 = sshll.u32 %s2251_s8, 3 }
  0x8e   : > { %v1354_v61 = vld [vmem:[#allocation7 + $0x68] sm:$0xff]   ;;  %v1356_v63 = vld [vmem:[#allocation7 + $0x78] sm:$0xff]   ;;  %v540_v1 = vld [vmem:[#allocation7 + $0xc0] sm:$0x1]  ;;  %s304_s30 = scalar_lea.vmem %s2226_s4, %s1262_s10 }
  0x8f   : > { %1430 = vmatpush3.bf16.msra.mxu0 %v1702_v3  ;;  %v541_v2 = vunpack.c.l.bf16 %v540_v1 }
  0x90   : > { %1431 = vmatprep.subr.bf16.mxu0 %v1894_v0 }
  0x91   : > { %v545_v3 = vrot.slane %v541_v2, %v2162_v22 }
  0x93   : > { %1432 = vmatpush3.bf16.msra.mxu0 %v1703_v4 }
  0x94   : > { %1433 = vmatprep.subr.bf16.mxu0 %v1894_v0 }
  0x97   : > { %1434 = vmatpush3.bf16.msra.mxu0 %v1704_v5 }
  0x98   : > { %1435 = vmatprep.subr.bf16.mxu0 %v1894_v0 }
  0x9b   : > { %1436 = vmatpush3.bf16.msra.mxu0 %v1705_v6 }
  0x9c   : > { %1437 = vmatprep.subr.bf16.mxu0 %v1894_v0 }
  0x9f   : > { %1438 = vmatpush3.bf16.msra.mxu0 %v1706_v7 }
  0xa0   : > { %1439 = vmatprep.subr.bf16.mxu0 %v1894_v0 }
  0xa3   : > { %1440 = vmatpush3.bf16.msra.mxu0 %v1707_v8 }
  0xa4   : > { %1441 = vmatprep.subr.bf16.mxu0 %v1894_v0 }
  0xa7   : > { %1442 = vmatpush3.bf16.msra.mxu0 %v1708_v9 }
  0xaa   : > { %1444 = vmatmul.mubr.bf16.vlgmr.msra.gmra.mrb[0].mxu0 %v1709_v10 }
 0x17d   : > { %v416_v12 = vpop.f32.mrb[0].mxu0 }
 0x17e   : > { %497 = vperm.xlu0 %1699, %v416_v12   ;;  %v1445_v13 = vpop.f32.mrb[1].mxu0 }
 0x17f   : > { %v419_v14 = vpop.f32.mrb[2].mxu0 }
 0x180   : > { %v1553_v15 = vpack.c.bf16 %v419_v14, %v416_v12  ;;  %v1446_v16 = vpop.f32.mrb[3].mxu0 }
 0x182   : > { %502 = vperm.xlu0 %1699, %v419_v14   ;;  %1554 = vmatpush3.bf16.xpose.msra.mxu1 %v1553_v15  ;;  %v736_v14 = vld [vmem:[#allocation7 + $0xd0] sm:$0x1] }
 0x183   : > { %1556 = vmatprep.subr.bf16.mxu1 %v1553_v15 }
 0x189   : > { %1452 = vmatmul.mubr.f32.vlgmr.msra.gmra.mrb[0].mxu1 %v424_v18 }
 0x18a   : > { %1558 = vmatpush3.bf16.msra.mxu1 %v1553_v15  ;;  %v737_v15 = vunpack.c.l.bf16 %v736_v14 }
 0x18b   : > { %1560 = vmatprep.subr.bf16.mxu1 %v1349_v50 }
 0x1fd   : > { %v498_v21 = vpop.permute.xlu0 %497 }
 0x201   : > { %v503_v26 = vpop.permute.xlu0 %502 }
 0x25c   : > { %v491_v23 = vpop.f32.mrb[0].mxu1 }
 0x25d   : > { %v508_v24 = vrot.slane %v491_v23, %v2162_v22  ;;  %v1453_v25 = vpop.f32.mrb[1].mxu1 }
 0x25f   : > { %v509_v28 = vadd.f32 %v508_v24, %v498_v21  ;;  %v510_v29 = vadd.f32 %v508_v24, %v503_v26 }
 0x261   : > { %v511_v30 = vmul.f32 0.2, %v509_v28  ;;  %v512_v31 = vmul.f32 0.2, %v510_v29 }
 0x263   : > { %v513_v33 = vmax.f32 %v509_v28, %v511_v30  ;;  %v514_v35 = vmax.f32 %v510_v29, %v512_v31 }
 0x265   : > { %v515_v36 = vadd.f32 %v1283_v32, %v513_v33  ;;  %v516_v38 = vadd.f32 %v1284_v34, %v514_v35 }
 0x267   : > { %v518_v37 = vsel %vm517_vm1, %v515_v36, -inf  ;;  %v521_v39 = vsel %vm517_vm1, %v516_v38, -inf }
 0x268   : > { %519 = vmax.xlane.f32.xlu1 %v518_v37 }
 0x26c   : > { %522 = vmax.xlane.f32.xlu1 %v521_v39 }
 0x2f5   : > { %v520_v40 = vpop.xlane.xlu1 %519 }
 0x2f6   : > { %v524_v41 = vsub.f32 %v515_v36, %v520_v40 }
 0x2f8   : > { %v526_v42 = vmul.f32 1.442695, %v524_v41 }
 0x2f9   : > { %v523_v43 = vpop.xlane.xlu1 %522 }
 0x2fa   : > { %1710 = vpow2.f32 %v526_v42  ;;  %v525_v44 = vsub.f32 %v516_v38, %v523_v43  ;;  %v1358_v42 = vld [vmem:[#allocation7 + $0x88] sm:$0xff]   ;;  %v1359_v43 = vld [vmem:[#allocation7 + $0x90] sm:$0xff]  }
 0x2fc   : > { %v528_v45 = vmul.f32 1.442695, %v525_v44  ;;  %v1360_v44 = vld [vmem:[#allocation7 + $0x98] sm:$0xff]  }
 0x2fe   : > { %1712 = vpow2.f32 %v528_v45  ;;  %v1361_v45 = vld [vmem:[#allocation7 + $0xa0] sm:$0xff]  }
 0x304   : > { %v1711_v46 = vpop.eup %1710 }
 0x305   : > { %v530_v47 = vsel %vm517_vm1, %v1711_v46, 0.0 }
 0x306   : > { %531 = vadd.xlane.f32.xlu0 %v530_v47  ;;  %v1363_v47 = vld [vmem:[#allocation7 + $0xb0] sm:$0xff]  }
 0x308   : > { %v1713_v48 = vpop.eup %1712 }
 0x309   : > { %v533_v49 = vsel %vm517_vm1, %v1713_v48, 0.0 }
 0x30a   : > { %534 = vadd.xlane.f32.xlu1 %v533_v49 }
 0x393   : > { %v532_v51 = vpop.xlane.xlu0 %531 }
 0x394   : > { %1714 = vrcp.f32 %v532_v51 }
 0x397   : > { %v535_v52 = vpop.xlane.xlu1 %534 }
 0x398   : > { %1716 = vrcp.f32 %v535_v52 }
 0x39e   : > { %v1715_v53 = vpop.eup %1714 }
 0x39f   : > { %v538_v54 = vmul.f32 %v1715_v53, %v1711_v46  ;;  %v1362_v46 = vld [vmem:[#allocation7 + $0xa8] sm:$0xff]  }
 0x3a1   : > { %1458 = vmatprep.mubr.msk.f32.mxu1 %vm517_vm1, %v538_v54  ;;  %v1364_v54 = vld [vmem:[#allocation7 + $0xb8] sm:$0xff]  }
 0x3a2   : > { %v1717_v55 = vpop.eup %1716 }
 0x3a3   : > { %v539_v56 = vmul.f32 %v1717_v55, %v1713_v48  ;;  %v852_v55 = vld [vmem:[#allocation7 + $0xc4] sm:$0x1] }
 0x3a5   : > { %1459 = vmatmul.mubr.msk.f32.vlgmr.msra.gmra.mrb[2].mxu1 %vm517_vm1, %v539_v56  ;;  %v853_v56 = vunpack.c.l.bf16 %v852_v55 }
 0x3a6   : > { %1562 = vmatpush3.bf16.msra.mxu1 %v1349_v50 }
 0x3a7   : > { %1564 = vmatprep.subr.bf16.mxu1 %v1350_v57 }
 0x3aa   : > { %1566 = vmatpush3.bf16.msra.mxu1 %v1350_v57  ;;  %v857_v57 = vrot.slane %v853_v56, %v2162_v22 }
 0x3ab   : > { %1568 = vmatprep.subr.bf16.mxu1 %v1351_v58 }
 0x3ae   : > { %1570 = vmatpush3.bf16.msra.mxu1 %v1351_v58 }
 0x3af   : > { %1572 = vmatprep.subr.bf16.mxu1 %v1352_v59 }
 0x3b2   : > { %1574 = vmatpush3.bf16.msra.mxu1 %v1352_v59 }
 0x3b3   : > { %1576 = vmatprep.subr.bf16.mxu1 %v1353_v60 }
 0x3b6   : > { %1578 = vmatpush3.bf16.msra.mxu1 %v1353_v60 }
 0x3b7   : > { %1580 = vmatprep.subr.bf16.mxu1 %v1354_v61 }
 0x3ba   : > { %1582 = vmatpush3.bf16.msra.mxu1 %v1354_v61 }
 0x3bb   : > { %1584 = vmatprep.subr.bf16.mxu1 %v1355_v62 }
 0x3be   : > { %1586 = vmatpush3.bf16.msra.mxu1 %v1355_v62  ;;  %v971_v62 = vld [vmem:[#allocation7 + $0xc8] sm:$0x1] }
 0x3bf   : > { %1588 = vmatprep.subr.bf16.mxu1 %v1356_v63 }
 0x3c2   : > { %1590 = vmatpush3.bf16.msra.mxu1 %v1356_v63  ;;  %v972_v63 = vunpack.c.l.bf16 %v971_v62 }
 0x3c3   : > { %1591 = vmatprep.subr.bf16.mxu1 %v1897_v11 }
 0x478   : > { %v1460_v4 = vpop.f32.mrb[2].mxu1 }
 0x479   : > { %v624_v5 = vadd.f32 %v1460_v4, %v545_v3  ;;  %v618_v6 = vpop.f32.mrb[3].mxu1 }
 0x47a   : > { %v619_v7 = vadd.f32 %v618_v6, %v545_v3  ;;  %v1052_v6 = vld [vmem:[%s263_s13] sm:$0xff] }
 0x47b   : > { %v628_v9 = vmax.f32 %v624_v5, 0.0 }
 0x47c   : > { %v627_v8 = vmax.f32 %v619_v7, 0.0 }
 0x47e   : > { %1493 = vmatprep.mubr.f32.mxu1 %v627_v8 }
 0x47f   : > { %1494 = vmatmul.mubr.f32.vlgmr.msra.gmra.mrb[4].mxu1 %v628_v9 }
 0x480   : > { %1500 = vmatprep.mubr.msk.f32.mxu1 %vm1895_vm0, %v1894_v0 }
 0x552   : > { %v1495_v10 = vpop.f32.mrb[4].mxu1 }
 0x553   : > { %v727_v12 = vpop.f32.mrb[5].mxu1 }
 0x554   : > { %v1592_v13 = vpack.c.bf16 %v1495_v10, %v727_v12  ;;  %810 = vperm.xlu1 %1700, %v727_v12  }
 0x556   : > { %1593 = vmatpush3.bf16.xpose.msra.mxu1 %v1592_v13 }
 0x557   : > { %1595 = vmatprep.subr.bf16.mxu1 %v1592_v13 }
 0x558   : > { %815 = vperm.xlu1 %1700, %v1495_v10  }
 0x55d   : > { %1501 = vmatmul.mubr.f32.vlgmr.msra.gmra.mrb[6].mxu1 %v737_v15 }
 0x55e   : > { %1597 = vmatpush3.bf16.msra.mxu1 %v1592_v13 }
 0x55f   : > { %1630 = vmatprep.subr.bf16.mxu1 %v1897_v11 }
 0x5d3   : > { %v811_v16 = vpop.permute.xlu1 %810 }
 0x5d7   : > { %v816_v20 = vpop.permute.xlu1 %815 }
 0x630   : > { %v804_v17 = vpop.f32.mrb[6].mxu1 }
 0x631   : > { %v821_v18 = vrot.slane %v804_v17, %v2162_v22  ;;  %v1502_v19 = vpop.f32.mrb[7].mxu1 }
 0x633   : > { %v822_v21 = vadd.f32 %v821_v18, %v811_v16  ;;  %v823_v23 = vadd.f32 %v821_v18, %v816_v20 }
 0x635   : > { %v824_v24 = vmul.f32 0.2, %v822_v21  ;;  %v825_v25 = vmul.f32 0.2, %v823_v23 }
 0x637   : > { %v827_v26 = vmax.f32 %v823_v23, %v825_v25  ;;  %v826_v28 = vmax.f32 %v822_v21, %v824_v24 }
 0x639   : > { %v829_v29 = vadd.f32 %v1284_v34, %v827_v26  ;;  %v828_v30 = vadd.f32 %v1283_v32, %v826_v28  ;;  %v1357_v32 = vld [vmem:[#allocation7 + $0x80] sm:$0xff]  }
 0x63a   : > { %1599 = vmatprep.subr.bf16.mxu0 %v1357_v32 }
 0x63b   : > { %v833_v11 = vsel %vm517_vm1, %v829_v29, -inf  ;;  %v830_v31 = vsel %vm517_vm1, %v828_v30, -inf  ;;  %1601 = vmatpush3.bf16.msra.mxu0 %v1357_v32 }
 0x63c   : > { %834 = vmax.xlane.f32.xlu0 %v833_v11  ;;  %831 = vmax.xlane.f32.xlu1 %v830_v31 }
 0x63d   : > { %1603 = vmatprep.subr.bf16.mxu0 %v1358_v42 }
 0x63f   : > { %1605 = vmatpush3.bf16.msra.mxu0 %v1358_v42 }
 0x640   : > { %1607 = vmatprep.subr.bf16.mxu0 %v1359_v43 }
 0x643   : > { %1609 = vmatpush3.bf16.msra.mxu0 %v1359_v43 }
 0x644   : > { %1611 = vmatprep.subr.bf16.mxu0 %v1360_v44 }
 0x647   : > { %1613 = vmatpush3.bf16.msra.mxu0 %v1360_v44 }
 0x648   : > { %1615 = vmatprep.subr.bf16.mxu0 %v1361_v45 }
 0x64b   : > { %1617 = vmatpush3.bf16.msra.mxu0 %v1361_v45 }
 0x64c   : > { %1619 = vmatprep.subr.bf16.mxu0 %v1362_v46 }
 0x64f   : > { %1621 = vmatpush3.bf16.msra.mxu0 %v1362_v46 }
 0x650   : > { %1623 = vmatprep.subr.bf16.mxu0 %v1363_v47 }
 0x653   : > { %1625 = vmatpush3.bf16.msra.mxu0 %v1363_v47 }
 0x654   : > { %1627 = vmatprep.subr.bf16.mxu0 %v1364_v54 }
 0x657   : > { %1629 = vmatpush3.bf16.msra.mxu0 %v1364_v54 }
 0x6c9   : > { %v835_v33 = vpop.xlane.xlu0 %834  ;;  %v832_v35 = vpop.xlane.xlu1 %831 }
 0x6ca   : > { %v837_v36 = vsub.f32 %v829_v29, %v835_v33  ;;  %v836_v37 = vsub.f32 %v828_v30, %v832_v35 }
 0x6cc   : > { %v838_v38 = vmul.f32 1.442695, %v836_v37  ;;  %v840_v39 = vmul.f32 1.442695, %v837_v36 }
 0x6ce   : > { %1718 = vpow2.f32 %v838_v38 }
 0x6cf   : > { %1720 = vpow2.f32 %v840_v39 }
 0x6d8   : > { %v1719_v40 = vpop.eup %1718 }
 0x6d9   : > { %v842_v34 = vsel %vm517_vm1, %v1719_v40, 0.0  ;;  %v1721_v41 = vpop.eup %1720 }
 0x6da   : > { %843 = vadd.xlane.f32.xlu0 %v842_v34  ;;  %v845_v27 = vsel %vm517_vm1, %v1721_v41, 0.0 }
 0x6de   : > { %846 = vadd.xlane.f32.xlu0 %v845_v27 }
 0x767   : > { %v844_v48 = vpop.xlane.xlu0 %843 }
 0x768   : > { %1722 = vrcp.f32 %v844_v48 }
 0x76b   : > { %v847_v49 = vpop.xlane.xlu0 %846 }
 0x76c   : > { %1724 = vrcp.f32 %v847_v49 }
 0x772   : > { %v1723_v50 = vpop.eup %1722 }
 0x773   : > { %v850_v51 = vmul.f32 %v1723_v50, %v1719_v40 }
 0x775   : > { %1507 = vmatprep.mubr.msk.f32.mxu1 %vm517_vm1, %v850_v51 }
 0x776   : > { %v1725_v52 = vpop.eup %1724 }
 0x777   : > { %v851_v53 = vmul.f32 %v1725_v52, %v1721_v41 }
 0x779   : > { %1508 = vmatmul.mubr.msk.f32.vlgmr.msra.gmra.mrb[8].mxu1 %vm517_vm1, %v851_v53 }
 0x77a   : > { %1549 = vmatprep.mubr.msk.f32.mxu1 %vm1895_vm0, %v1894_v0  ;;  %v976_v0 = vrot.slane %v972_v63, %v2162_v22 }
 0x84c   : > { %v1509_v58 = vpop.f32.mrb[8].mxu1 }
 0x84d   : > { %v930_v59 = vpop.f32.mrb[9].mxu1  ;;  %v936_v61 = vadd.f32 %v1509_v58, %v857_v57 }
 0x84e   : > { %v931_v60 = vadd.f32 %v930_v59, %v857_v57 }
 0x850   : > { %1542 = vmatprep.mubr.f32.mxu0 %v931_v60 }
 0x851   : > { %1543 = vmatmul.mubr.f32.vlgmr.msra.gmra.mrb[4].mxu0 %v936_v61 }
 0x924   : > { %v1544_v1 = vpop.f32.mrb[4].mxu0 }
 0x925   : > { %v1049_v2 = vadd.f32 %v1544_v1, %v976_v0  ;;  %v1043_v3 = vpop.f32.mrb[5].mxu0 }
 0x926   : > { %v1044_v4 = vadd.f32 %v1043_v3, %v976_v0 }
 0x928   : > { %v1631_v5 = vpack.c.bf16 %v1049_v2, %v1044_v4 }
 0x92a   : > { %1632 = vmatpush3.bf16.msra.mxu1 %v1631_v5 }
 0x92d   : > { %1550 = vmatmul.mubr.msk.f32.vlgmr.msra.gmra.mrb[10].mxu1 %vm517_vm1, %v1052_v6 }
 0xa00   : > { %v1122_v7 = vpop.f32.mrb[10].mxu1 }
 0xa01   : > { %1126 = vst [vmem:[%s304_s30] sm:$0xff] %v1122_v7  ;;  %v1551_v22 = vpop.f32.mrb[11].mxu1 }
 0xa02 PF: > { %p18_p3 = scmp.ge.s32.totalorder %s1944_s19, 6   ;;  %s2246_s15 = smov %s1878_s16 }
 0xa03   : > { %s2247_s16 = smov %s1882_s17  ;;  %s2248_s17 = smov %s1953_s22 }
 0xa04   : > { %s2249_s18 = smov %s1944_s19  ;;  %20 = sbr.rel (!%p18_p3) target bundleno = 6 (0x6), region = 104 }
 0xa0b   :  { %1146 = vsyncpa [#allocation3], 1 }
 0xa0c   :  { %1148 = vsyncpa [#allocation3 + $0x1], 1 }
 0xa0d   :  { %1149 = vsyncpa [#allocation5], 1 }
 0xa0e   :  { %1151 = vsyncpa [#allocation5 + $0x1], 1 }
 0xa0f   :  { %1152 = vsyncpa [#allocation8], 1 }

</bundles_post_ra>
